<compile_context>
chip_gen: v7x
topology: tpu7x:2x2x1
jax: 0.10.0
libtpu: 0.0.40
codegen_flags: <defaults>
</compile_context>

<pallas_src>
import jax
import jax.numpy as jnp
from jax.experimental import pallas as pl
from jax.experimental.pallas import tpu as pltpu


_VMEM_BUDGET = 48 * 1024 * 1024   # v7x-safe (64 MiB/TC); conservative on v5e/v6e (128 MiB)
_MAX_BT = 16                      # bound on unrolled per-batch matmuls per grid step


def _round_up(x, m):
    return (x + m - 1) // m * m


def _plan_tiling(B, K, P_pad, n_pad, wt_itemsize, kern_itemsize):
    """Choose (bt, tile_n, kern_resident, vmem_bytes) under an explicit VMEM budget.

    Accounts for every resident buffer (double-buffered wt + out blocks, the
    f32 accumulator and the kern cache), not just the wt block.
    """
    lane_k = _round_up(K, 128)      # VMEM lane-pads the K axis of wt/out/acc blocks

    def vmem_bytes(bt, tile_n, kern_resident):
        wt_blk = 2 * bt * tile_n * lane_k * wt_itemsize            # double-buffered input
        out_blk = 2 * bt * P_pad * lane_k * 4                      # double-buffered output
        acc_blk = bt * P_pad * lane_k * 4                          # f32 accumulator scratch
        kern_elems = P_pad * (n_pad if kern_resident else tile_n)
        kern_blk = 2 * kern_elems * kern_itemsize                  # (double-)buffered kern
        return wt_blk + out_blk + acc_blk + kern_blk

    tile_candidates = [t for t in (512, 384, 256, 128) if n_pad % t == 0]
    divisors = [d for d in range(1, B + 1) if B % d == 0 and d <= _MAX_BT]
    # Prefer >= 2 iterations on the parallel batch axis so both v7x TCs get work.
    bt_candidates = [d for d in divisors if B // d >= 2] or divisors

    for kern_resident in (True, False):   # residency avoids re-fetching kern per batch tile
        for bt in sorted(bt_candidates, reverse=True):
            for tile_n in tile_candidates:
                v = vmem_bytes(bt, tile_n, kern_resident)
                if v <= _VMEM_BUDGET:
                    return bt, tile_n, kern_resident, v
    # Degenerate shapes (huge P): smallest blocks, kern streamed per tile.
    bt, tile_n = 1, tile_candidates[-1]
    return bt, tile_n, False, vmem_bytes(bt, tile_n, False)


def _compiler_params(dimension_semantics, vmem_bytes):
    # Derive the VMEM limit from the accounting instead of a hard-coded value.
    limit = int(max(vmem_bytes + 4 * 1024 * 1024, 16 * 1024 * 1024))
    return pltpu.CompilerParams(dimension_semantics=dimension_semantics,
                                vmem_limit_bytes=limit)


def _rbf_kernel(ls_ref, dists_ref, kern_ref):
    # ls_ref:    (1,)                 SMEM  -- learnable length scale
    # dists_ref: (P_pad, tile_n)      VMEM  -- squared-distance tile
    # kern_ref:  (1, P_pad, tile_n)   VMEM  -- RBF weights for this tile
    ls = ls_ref[0]
    # NOTE: matches torch semantics; blows up if the trained ls reaches 0.
    scale = -0.5 / (ls * ls)
    kern_ref[0] = jnp.exp(dists_ref[...] * scale).astype(kern_ref.dtype)


def _make_contract_kernel(kern_resident):
    """out[b, p, k] = sum_n kern[p, n] * wt[b, n, k], tiled over (batch, N)."""

    def kernel(kern_ref, wt_ref, out_ref, acc_ref):
        # kern_ref: (n_tiles, P_pad, tile_n) if resident else (1, P_pad, tile_n)
        # wt_ref:   (bt, tile_n, K)   -- natural layout, streamed once from HBM
        # out_ref:  (bt, P_pad, K)
        # acc_ref:  (bt, P_pad, K) f32 scratch accumulator
        n = pl.program_id(1)

        @pl.when(n == 0)
        def _init():
            acc_ref[...] = jnp.zeros_like(acc_ref)

        kern = kern_ref[n] if kern_resident else kern_ref[0]    # (P_pad, tile_n)

        # MXU-native orientation: LHS contraction in lanes, RHS in sublanes
        # (no per-tile transpose of the streamed wt operand).
        for i in range(wt_ref.shape[0]):                        # bt is static -> unrolled
            acc_ref[i] += jnp.dot(kern, wt_ref[i],
                                  preferred_element_type=jnp.float32)

        @pl.when(n == pl.num_programs(1) - 1)
        def _store():
            out_ref[...] = acc_ref[...].astype(out_ref.dtype)

    return kernel


def param_layer_forward(wt, dists, init_ls):
    """Pallas equivalent of ParamLayer.forward(wt, dists) -> (B, P, K).

    wt is consumed in its natural (B, I*J, K) layout in its own dtype: pass
    bf16 wt (cast once where it is produced) to halve its HBM stream.
    """
    B, I, J, K = wt.shape
    P = dists.shape[0]
    N = I * J

    wt_r = wt.reshape(B, N, K)                  # spatial-dim merge only; no transpose/cast
    dists_r = dists.reshape(P, N).astype(jnp.float32)

    kern_dtype = wt_r.dtype                     # stream RBF weights in wt's dtype
    wt_item = jnp.dtype(wt_r.dtype).itemsize
    kern_item = jnp.dtype(kern_dtype).itemsize

    # Pad P to a sublane multiple (8 for f32, 16 for bf16) and N to a lane multiple.
    P_pad = _round_up(P, max(8, 32 // kern_item))
    n_pad = _round_up(N, 128)

    bt, tile_n, kern_resident, vmem_main = _plan_tiling(
        B, K, P_pad, n_pad, wt_item, kern_item)
    n_tiles = n_pad // tile_n

    if P_pad != P or n_pad != N:
        # Huge squared distance in the padding -> RBF weight exactly 0 there.
        dists_r = jnp.pad(dists_r, ((0, P_pad - P), (0, n_pad - N)),
                          constant_values=1e30)
    if n_pad != N:
        wt_r = jnp.pad(wt_r, ((0, 0), (0, n_pad - N), (0, 0)))

    ls = jnp.asarray(init_ls, jnp.float32).reshape(1)

    # --- Kernel 1: RBF weights, computed once (not once per batch tile). ---
    vmem_rbf = 2 * P_pad * tile_n * (4 + kern_item)
    kern = pl.pallas_call(
        _rbf_kernel,
        out_shape=jax.ShapeDtypeStruct((n_tiles, P_pad, tile_n), kern_dtype),
        grid=(n_tiles,),
        in_specs=[
            pl.BlockSpec(memory_space=pltpu.MemorySpace.SMEM),      # init_ls
            pl.BlockSpec((P_pad, tile_n), lambda n: (0, n)),        # dists tile
        ],
        out_specs=pl.BlockSpec((1, P_pad, tile_n), lambda n: (n, 0, 0)),
        compiler_params=_compiler_params(("parallel",), vmem_rbf),
    )(ls, dists_r)

    # --- Kernel 2: streaming contraction over N with an f32 VMEM accumulator. ---
    if kern_resident:
        # Constant index_map -> the whole kern array stays resident in VMEM,
        # so it is not re-fetched for every batch tile.
        kern_spec = pl.BlockSpec((n_tiles, P_pad, tile_n), lambda b, n: (0, 0, 0))
    else:
        kern_spec = pl.BlockSpec((1, P_pad, tile_n), lambda b, n: (n, 0, 0))

    out = pl.pallas_call(
        _make_contract_kernel(kern_resident),
        out_shape=jax.ShapeDtypeStruct((B, P_pad, K), jnp.float32),
        grid=(B // bt, n_tiles),
        in_specs=[
            kern_spec,
            pl.BlockSpec((bt, tile_n, K), lambda b, n: (b, n, 0)),   # wt, natural layout
        ],
        out_specs=pl.BlockSpec((bt, P_pad, K), lambda b, n: (b, 0, 0)),
        scratch_shapes=[pltpu.VMEM((bt, P_pad, K), jnp.float32)],
        compiler_params=_compiler_params(("parallel", "arbitrary"), vmem_main),
    )(kern, wt_r)

    return out[:, :P, :]


if __name__ == "__main__":
    INIT_LS = 0.5
    # Small shapes consistent with the einsum: wt (B,I,J,K), dists (P,I,J).
    B, I, J, K, P = 2, 16, 16, 8, 4

    key = jax.random.PRNGKey(0)
    k_wt, k_d = jax.random.split(key)
    wt = jax.random.normal(k_wt, (B, I, J, K), dtype=jnp.float32)
    dists = jax.random.uniform(k_d, (P, I, J), dtype=jnp.float32)   # squared dists >= 0

    # Pure-JAX f32 reference (same math as the torch module).
    kern_ref = jnp.exp(-0.5 * dists / (jnp.float32(INIT_LS) ** 2))
    ref_f32 = jnp.einsum('bijk,pij->bpk', wt, kern_ref)

    # f32 path: wt streamed in its own dtype; tight check vs the f32 reference.
    out_f32 = jax.block_until_ready(param_layer_forward(wt, dists, INIT_LS))
    assert out_f32.shape == (B, P, K), out_f32.shape
    assert jnp.allclose(out_f32, ref_f32, atol=1e-4, rtol=1e-4), \
        float(jnp.max(jnp.abs(out_f32 - ref_f32)))

    # bf16 fast path: the caller casts wt once where it is produced (no per-call
    # cast pass inside the wrapper).  Check vs a bf16-rounded reference.
    out_bf16 = jax.block_until_ready(
        param_layer_forward(wt.astype(jnp.bfloat16), dists, INIT_LS))
    wt_bf = wt.astype(jnp.bfloat16).astype(jnp.float32)
    kern_bf = kern_ref.astype(jnp.bfloat16).astype(jnp.float32)
    ref_bf = jnp.einsum('bijk,pij->bpk', wt_bf, kern_bf)
    assert out_bf16.shape == (B, P, K), out_bf16.shape
    assert jnp.allclose(out_bf16, ref_bf, atol=1e-2, rtol=1e-2), \
        float(jnp.max(jnp.abs(out_bf16 - ref_bf)))

    print("KERNEL_OK")
</pallas_src>

<mosaic_0001>
module attributes {stable_mosaic.version = 11 : i64} {
  func.func @_rbf_kernel(%arg0: i32, %arg1: memref<1xf32, #tpu.memory_space<smem>>, %arg2: memref<8x256xf32, #tpu.memory_space<vmem>>, %arg3: memref<1x8x256xf32, #tpu.memory_space<vmem>>) attributes {dimension_semantics = [#tpu.dimension_semantics<parallel>], iteration_bounds = array<i64: 1>, scalar_prefetch = 0 : i64, scratch_operands = 0 : i64, tpu.core_type = #tpu.core_type<tc>, window_params = [{transform_indices = @transform_0, window_bounds = array<i64: 1>}, {transform_indices = @transform_1, window_bounds = array<i64: 8, 256>}, {transform_indices = @transform_2, window_bounds = array<i64: 1, 8, 256>}]} {
    %c0 = arith.constant 0 : index
    %0 = memref.load %arg1[%c0] : memref<1xf32, #tpu.memory_space<smem>>
    %1 = arith.mulf %0, %0 : f32
    %cst = arith.constant -5.000000e-01 : f32
    %2 = arith.divf %cst, %1 : f32
    %c0_0 = arith.constant 0 : index
    %c0_1 = arith.constant 0 : index
    %3 = vector.load %arg2[%c0_0, %c0_1] : memref<8x256xf32, #tpu.memory_space<vmem>>, vector<8x256xf32>
    %4 = vector.broadcast %2 : f32 to vector<8x256xf32>
    %5 = arith.mulf %3, %4 : vector<8x256xf32>
    %6 = math.exp %5 : vector<8x256xf32>
    %c0_2 = arith.constant 0 : index
    %c0_3 = arith.constant 0 : index
    %c0_4 = arith.constant 0 : index
    %7 = vector.load %arg3[%c0_2, %c0_3, %c0_4] : memref<1x8x256xf32, #tpu.memory_space<vmem>>, vector<1x8x256xf32>
    %8 = vector.shape_cast %7 : vector<1x8x256xf32> to vector<8x256xf32>
    %9 = vector.shape_cast %6 : vector<8x256xf32> to vector<1x8x256xf32>
    tpu.vector_store %arg3[%c0_2, %c0_3, %c0_4], %9 {strides = array<i32>} : memref<1x8x256xf32, #tpu.memory_space<vmem>>, vector<1x8x256xf32>,
    return
  }
  func.func @transform_0(%arg0: i32) -> i32 {
    %c0_i32 = arith.constant 0 : i32
    %c0_i32_0 = arith.constant 0 : i32
    return %c0_i32 : i32
  }
  func.func @transform_1(%arg0: i32) -> (i32, i32) {
    %c0_i32 = arith.constant 0 : i32
    %c0_i32_0 = arith.constant 0 : i32
    return %c0_i32, %arg0 : i32, i32
  }
  func.func @transform_2(%arg0: i32) -> (i32, i32, i32) {
    %c0_i32 = arith.constant 0 : i32
    %c0_i32_0 = arith.constant 0 : i32
    %c0_i32_1 = arith.constant 0 : i32
    return %arg0, %c0_i32, %c0_i32_0 : i32, i32, i32
  }
}

</mosaic_0001>

<bundles_post_ra>
// kernel: tpu_custom_call.1
= control target key start
LH: loop header
LB: loop body
LE: loop exit
PB: predicated region body
PF: predicated region fallthrough
CT: control target
= control target key end

     0   :  { %8 = vsyncpa [#allocation4], 0  ;;  %s160_s0 = inlined_call_operand.<no memory space> [shape: f32[1], index: 0, kind: input, shape index: {}]   ;;  %s161_s1 = inlined_call_operand.hbm [shape: f32[8,256], index: 1, kind: input, shape index: {}]   ;;  %s162_s2 = inlined_call_operand.hbm [shape: f32[1,8,256], index: 2, kind: output, shape index: {}]  }
   0x1   :  { %9 = vsyncpa [#allocation5], 0  ;;  %s115_s9 = smov [#allocation3]   ;;  %s67_s13 = scalar_lea.hbm %s161_s1, 256 }
   0x2   :  { %s18_s10 = sshll.u32 %s115_s9, 4  ;;  %p68_p0 = scmp.ne.s32.totalorder %s161_s1, %s67_s13  ;;  %s19_s10 = int_to_ptr.vmem [resolvable:$true] %s18_s10 }
   0x3   :  { %p71_p1 = scmp.lt.u32.totalorder %s67_s13, %s161_s1 }
   0x5   :  { %p73_p2 = pnand %p71_p1, %p68_p0 }
   0x7   :  { %76 = shalt.err (!%p73_p2)
}
   0x8   :  { %s77_s18 = scalar_lea.vmem %s19_s10, 256  ;;  %p82_p4 = scmp.lt.s32.totalorder %s19_s10, %s19_s10 }
   0x9   :  { %p78_p3 = scmp.ne.s32.totalorder %s19_s10, %s77_s18  ;;  %p83_p5 = scmp.lt.s32.totalorder %s77_s18, %s77_s18 }
   0xb   :  { %p84_p6 = por %p83_p5, %p82_p4 }
   0xd   :  { %p85_p7 = pnand %p84_p6, %p78_p3 }
   0xf   :  { %88 = shalt.err (!%p85_p7)
}
  0x10   :  { %21 = dma.hbm_to_vmem [thread:$0]  %s161_s1, 256, %s19_s10, [#allocation4]  }
  0x11   :  { %s26_s23 = smul.f32 %s160_s0, %s160_s0 }
  0x12   :  { %111 = dma.done.wait [#allocation4], 256  }
  0x13   :  { %112 = vsyncadd [#allocation4], 4294967040  ;;  %v27_v0 = vstv %s26_s23  ;;  %v31_v2 = vld [vmem:[#allocation3] sm:$0xff]  ;;  %v32_v3 = vld [vmem:[#allocation3 + $0x8] sm:$0xff]  ;;  %s116_s1 = smov [#allocation6]  }
  0x14   :  { %61 = vrcp.f32 %v27_v0  ;;  %s48_s26 = sshll.u32 %s116_s1, 4  ;;  %s49_s26 = int_to_ptr.vmem [resolvable:$true] %s48_s26 }
  0x15   :  { %s89_s0 = scalar_lea.vmem %s49_s26, 256  ;;  %p94_p9 = scmp.lt.s32.totalorder %s49_s26, %s49_s26 }
  0x16   :  { %p90_p8 = scmp.ne.s32.totalorder %s49_s26, %s89_s0  ;;  %p95_p10 = scmp.lt.s32.totalorder %s89_s0, %s89_s0 }
  0x18   :  { %p96_p11 = por %p95_p10, %p94_p9 }
  0x1a   :  { %p97_p12 = pnand %p96_p11, %p90_p8 }
  0x1e   :  { %v62_v1 = vpop.eup %61 }
  0x1f   :  { %57 = vpush %v62_v1 }
  0x50   :  { %s58_s24 = spop %57 }
  0x51   :  { %s30_s25 = smul.f32 -0.5, %s58_s24 }
  0x53   :  { %v33_v4 = vstv %s30_s25 }
  0x54   :  { %v34_v5 = vmul.f32 %v33_v4, %v31_v2  ;;  %v35_v6 = vmul.f32 %v33_v4, %v32_v3 }
  0x56   :  { %v36_v7 = vmul.f32 1.442695, %v34_v5  ;;  %v38_v8 = vmul.f32 1.442695, %v35_v6 }
  0x58   :  { %63 = vpow2.f32 %v36_v7 }
  0x59   :  { %65 = vpow2.f32 %v38_v8 }
  0x62   :  { %v64_v9 = vpop.eup %63 }
  0x63   :  { %v66_v10 = vpop.eup %65  ;;  %40 = vst [vmem:[#allocation6] sm:$0xff] %v64_v9 }
  0x64   :  { %41 = vst [vmem:[#allocation6 + $0x8] sm:$0xff] %v66_v10 }
  0x65   :  { %100 = shalt.err (!%p97_p12)
}
  0x66   :  { %s101_s29 = scalar_lea.hbm %s162_s2, 256 }
  0x67   :  { %p102_p13 = scmp.ne.s32.totalorder %s162_s2, %s101_s29  ;;  %p105_p0 = scmp.lt.u32.totalorder %s101_s29, %s162_s2 }
  0x69   :  { %p107_p1 = pnand %p105_p0, %p102_p13 }
  0x6b   :  { %110 = shalt.err (!%p107_p1)
}
  0x6c   :  { %51 = dma.vmem_to_hbm [thread:$0]  %s49_s26, 256, %s162_s2, [#allocation5]  }
  0x6d   :  { %113 = dma.done.wait [#allocation5], 256  }
  0x6e   :  { %114 = vsyncadd [#allocation5], 4294967040 }
  0x6f   :  { %55 = vsyncpa [#allocation4], 1 }
  0x70   :  { %56 = vsyncpa [#allocation5], 1 }

</bundles_post_ra>
